<compile_context>
chip_gen: v7x
topology: tpu7x:2x2x1
jax: 0.10.0
libtpu: 0.0.40
codegen_flags: <defaults>
</compile_context>

<pallas_src>
import math

import jax
import jax.numpy as jnp
from jax.experimental import pallas as pl
from jax.experimental.pallas import tpu as pltpu

_LANES = 128


def make_positional_encoding(d_model: int, seq_len: int = 5000,
                             dtype=jnp.float32) -> jnp.ndarray:
    """Init-time sinusoidal PE buffer, shape (seq_len, d_model), in `dtype`.

    Matches the PyTorch module's __init__:
        pe[:, 0::2] = sin(position * div_term)
        pe[:, 1::2] = cos(position * div_term)
    Casting to the model dtype here (once) removes a per-forward convert op
    that would otherwise read+write S*D elements of HBM before the kernel runs.
    Note: if dtype is bf16 this quantizes pe before the add (<= 1 ulp vs. the
    fp32-add-then-downcast reference) — standard practice, documented here.
    """
    position = jnp.arange(seq_len, dtype=jnp.float32)[:, None]              # (S, 1)
    div_term = jnp.exp(
        jnp.arange(0, d_model, 2, dtype=jnp.float32) * (-math.log(10000.0) / d_model)
    )                                                                        # (D/2,)
    angles = position * div_term                                             # (S, D/2)
    pe = jnp.zeros((seq_len, d_model), dtype=jnp.float32)
    pe = pe.at[:, 0::2].set(jnp.sin(angles))
    pe = pe.at[:, 1::2].set(jnp.cos(angles))
    return pe.astype(dtype)


def _pe_add_kernel(x_ref, pe_ref, o_ref):
    # Batch dim is squeezed out of the x/out blocks; both refs are (TR, C).
    # Flat 2-D vreg add — no per-iteration broadcast_in_dim.
    o_ref[...] = x_ref[...] + pe_ref[...]


def _row_tile(num_rows: int, row_bytes: int, itemsize: int,
              prefer_even_blocks: bool, target_bytes: int = 4 << 20) -> int:
    """Pick a row-tile size.

    ~4 MiB per tile: 3 streams x 2 pipeline buffers x 4 MiB = 24 MiB of VMEM,
    inside v6e/v7x's 32 MiB scoped default (v5e's 16 MiB default is raised via
    vmem_limit_bytes by the caller) and well inside v7x's 64 MiB physical VMEM.
    Prefer a granule-multiple divisor of num_rows so every grid step is a full,
    unmasked-vst tile; prefer an even block count when asked (v7x 2-TC split).
    """
    # Sublane packing granule: 8 rows f32, 16 bf16, 32 int8.
    granule = 8 * max(1, 4 // max(1, itemsize))
    cap = max(granule, target_bytes // max(1, row_bytes))
    if cap >= num_rows:
        # Whole extent fits in one tile. If batch==1 that leaves one v7x core
        # idle, so split in two when it stays granule-aligned and exact.
        if prefer_even_blocks and num_rows % (2 * granule) == 0:
            return num_rows // 2
        return num_rows
    cap = (cap // granule) * granule
    best = None
    best_even = None
    t = cap
    while t >= granule:
        if num_rows % t == 0:
            if best is None:
                best = t
            if (num_rows // t) % 2 == 0:
                best_even = t
                break
        t -= granule
    if prefer_even_blocks and best_even is not None and best_even * 2 >= best:
        return best_even
    if best is not None:
        return best
    return cap  # remainder tile; Pallas masks the edge (correct, slightly slower)


def positional_encoding_forward(x: jnp.ndarray, pe: jnp.ndarray) -> jnp.ndarray:
    """x: (B, S, D); pe: (seq_len, D), seq_len >= S, ideally in x.dtype.

    Returns x + pe[:S] (broadcast over batch).
    """
    B, S, D = x.shape
    L = pe.shape[0]
    if pe.dtype != x.dtype:
        # Fallback glue only — prefer building the buffer in the model dtype
        # at init (make_positional_encoding(..., dtype=...)).
        pe = pe.astype(x.dtype)

    itemsize = jnp.dtype(x.dtype).itemsize
    granule = 8 * max(1, 4 // max(1, itemsize))

    # Lane-dense view: fold (S, D) into rows of 128 lanes so output stores are
    # unmasked full-lane vst's. Elementwise add is layout agnostic, so this is
    # pure layout plumbing.
    if (S * D) % _LANES == 0:
        R, C = (S * D) // _LANES, _LANES
        x2 = x.reshape(B, R, C)
    else:
        # TODO(synk): for narrow d_model (D < 128, S*D % 128 != 0) pad D up to
        # 128 to avoid masked vst.msk stores; typical d_model avoids this path.
        R, C = S, D
        x2 = x

    TR = _row_tile(R, C * itemsize, itemsize, prefer_even_blocks=(B == 1))
    n_r = pl.cdiv(R, TR)

    # pe handling: when the full (seq_len, D) buffer folds lane-dense AND the
    # tile is sublane-granule aligned against the taller buffer, pass it
    # unsliced (a contiguous reshape is free) — the grid only touches the first
    # R = S*D/128 rows, so no per-call slice/copy of pe is ever materialized.
    r_full = (L * D) // _LANES if (L * D) % _LANES == 0 else 0
    use_full_pe = (
        C == _LANES
        and r_full > 0
        and TR % granule == 0
        and n_r * TR <= r_full
    )
    if use_full_pe:
        pe2 = pe.reshape(r_full, _LANES)
    elif C == _LANES:
        pe2 = pe[:S, :].reshape(R, C)
    else:
        pe2 = pe[:S, :]

    tile_bytes = TR * C * itemsize
    # 3 streams (x, pe, out) x 2 pipeline buffers, plus headroom for internal
    # scratch. Explicit so v5e's 16 MiB scoped-VMEM default does not reject the
    # 4 MiB tiles; capped comfortably inside v7x's 64 MiB physical VMEM.
    vmem_limit = int(min(48 << 20, max(16 << 20, 6 * tile_bytes + (4 << 20))))

    out = pl.pallas_call(
        _pe_add_kernel,
        out_shape=jax.ShapeDtypeStruct((B, R, C), x.dtype),
        grid_spec=pl.GridSpec(
            # Row tiles outer, batch inner: the pe block index depends only on
            # the outer axis, so each pe tile is DMA'd once, not B times.
            grid=(n_r, B),
            in_specs=[
                pl.BlockSpec((None, TR, C), lambda r, b: (b, r, 0)),  # x tile (TR, C)
                pl.BlockSpec((TR, C), lambda r, b: (r, 0)),           # shared pe tile
            ],
            out_specs=pl.BlockSpec((None, TR, C), lambda r, b: (b, r, 0)),
        ),
        # Write the result back into x's HBM buffer (no second B*S*D alloc);
        # donate x at the jit boundary to make the alias real.
        input_output_aliases={0: 0},
        compiler_params=pltpu.CompilerParams(
            dimension_semantics=("parallel", "parallel"),
            vmem_limit_bytes=vmem_limit,
        ),
        cost_estimate=pl.CostEstimate(
            flops=B * S * D,
            transcendentals=0,
            bytes_accessed=(2 * B + 1) * S * D * itemsize,
        ),
    )(x2, pe2)
    return out.reshape(B, S, D)


if __name__ == "__main__":
    # Small shapes consistent with the module's forward: (batch, seq, d_model).
    B, S, D = 2, 8, 32
    SEQ_LEN = 64  # module default is 5000; any seq_len >= S is equivalent

    key = jax.random.PRNGKey(0)
    x = jax.random.normal(key, (B, S, D), dtype=jnp.float32)

    # Init-time buffer, already in the model dtype (hoisted out of the forward).
    pe = make_positional_encoding(D, SEQ_LEN, dtype=x.dtype)

    # Reference computed BEFORE the kernel call: x's buffer is donated below.
    ref = jax.block_until_ready(x + pe[None, :S, :])

    fwd = jax.jit(positional_encoding_forward, donate_argnums=(0,))
    out = jax.block_until_ready(fwd(x, pe))

    assert out.shape == (B, S, D)
    assert jnp.allclose(out, ref, atol=1e-6), "mismatch vs reference"

    print("KERNEL_OK")
</pallas_src>

<mosaic_0001>
module attributes {stable_mosaic.version = 11 : i64} {
  func.func @_pe_add_kernel(%arg0: i32, %arg1: i32, %arg2: memref<1x2x128xf32, #tpu.memory_space<vmem>>, %arg3: memref<2x128xf32, #tpu.memory_space<vmem>>, %arg4: memref<1x2x128xf32, #tpu.memory_space<vmem>>) attributes {dimension_semantics = [#tpu.dimension_semantics<parallel>, #tpu.dimension_semantics<parallel>], iteration_bounds = array<i64: 1, 2>, scalar_prefetch = 0 : i64, scratch_operands = 0 : i64, tpu.core_type = #tpu.core_type<tc>, window_params = [{transform_indices = @transform_0, window_bounds = array<i64: 1, 2, 128>}, {transform_indices = @transform_1, window_bounds = array<i64: 2, 128>}, {transform_indices = @transform_2, window_bounds = array<i64: 1, 2, 128>}]} {
    %c0 = arith.constant 0 : index
    %c0_0 = arith.constant 0 : index
    %c0_1 = arith.constant 0 : index
    %0 = vector.load %arg2[%c0, %c0_0, %c0_1] : memref<1x2x128xf32, #tpu.memory_space<vmem>>, vector<1x2x128xf32>
    %1 = vector.shape_cast %0 : vector<1x2x128xf32> to vector<2x128xf32>
    %c0_2 = arith.constant 0 : index
    %c0_3 = arith.constant 0 : index
    %2 = vector.load %arg3[%c0_2, %c0_3] : memref<2x128xf32, #tpu.memory_space<vmem>>, vector<2x128xf32>
    %3 = arith.addf %1, %2 : vector<2x128xf32>
    %c0_4 = arith.constant 0 : index
    %c0_5 = arith.constant 0 : index
    %c0_6 = arith.constant 0 : index
    %4 = vector.load %arg4[%c0_4, %c0_5, %c0_6] : memref<1x2x128xf32, #tpu.memory_space<vmem>>, vector<1x2x128xf32>
    %5 = vector.shape_cast %4 : vector<1x2x128xf32> to vector<2x128xf32>
    %6 = vector.shape_cast %3 : vector<2x128xf32> to vector<1x2x128xf32>
    tpu.vector_store %arg4[%c0_4, %c0_5, %c0_6], %6 {strides = array<i32>} : memref<1x2x128xf32, #tpu.memory_space<vmem>>, vector<1x2x128xf32>,
    return
  }
  func.func @transform_0(%arg0: i32, %arg1: i32) -> (i32, i32, i32) {
    %c0_i32 = arith.constant 0 : i32
    %c0_i32_0 = arith.constant 0 : i32
    return %arg1, %arg0, %c0_i32 : i32, i32, i32
  }
  func.func @transform_1(%arg0: i32, %arg1: i32) -> (i32, i32) {
    %c0_i32 = arith.constant 0 : i32
    %c0_i32_0 = arith.constant 0 : i32
    return %arg0, %c0_i32 : i32, i32
  }
  func.func @transform_2(%arg0: i32, %arg1: i32) -> (i32, i32, i32) {
    %c0_i32 = arith.constant 0 : i32
    %c0_i32_0 = arith.constant 0 : i32
    return %arg1, %arg0, %c0_i32 : i32, i32, i32
  }
}

</mosaic_0001>

<bundles_post_ra>
// kernel: positional_encoding_forward.1
= control target key start
LH: loop header
LB: loop body
LE: loop exit
PB: predicated region body
PF: predicated region fallthrough
CT: control target
= control target key end

     0   :  { %s354_s9 = smov 0   ;;  %s331_s10 = smov 0   ;;  %s368_s0 = inlined_call_operand.vmem [shape: f32[2,2,128], index: 0, kind: input, shape index: {}, may-alias: {0,2}]   ;;  %s369_s1 = inlined_call_operand.vmem [shape: f32[2,128], index: 1, kind: input, shape index: {}]   ;;  %s370_s2 = inlined_call_operand.vmem [shape: f32[2,2,128], index: 2, kind: output, shape index: {}, may-alias: {0,2}]  }
   0x1   :  { %s335_s11 = smov 0  }
   0x2 LB: > { %s21_s12 = sadd.s32 1, %s333_s10  ;;  %p286_p0 = scmp.ge.s32.totalorder %s337_s11, 1  ;;  %s337_s11 = sphi %s335_s11, %s12_s11   ;;  %s333_s10 = sphi %s331_s10, %s332_s10   ;;  %s329_s9 = sphi %s354_s9, %s371_s9  }
   0x3   : > { %p22_p1 = scmp.ge.s32.totalorder %s21_s12, 2  ;;  %p139_p2 = scmp.lt.s32.totalorder %s337_s11, 3 }
   0x5   : > { %s373_s12 = smov (%p22_p1, %s21_s12), 0  ;;  %p140_p3 = pnand %p286_p0, %p139_p2 }
   0x6   : > { %p169_p4 = scmp.lt.s32.totalorder (!%p140_p3), %s329_s9, 1  ;;  %v188_v0 = vld [vmem:[%s369_s1] sm:$0x3] (!%p140_p3) }
   0x7   : > { %143 = sbr.rel (%p140_p3) target bundleno = 21 (0x15), region = 28 }
   0xe   : > { %s375_s9 = smov (!%p169_p4, %s329_s9), 1 }
   0xf   : > { %s287_s13 = sshll.u32 %s375_s9, 1 }
  0x10   : > { %s175_s18 = scalar_lea.vmem %s368_s0, %s287_s13  ;;  %s186_s21 = scalar_lea.vmem %s370_s2, %s287_s13 }
  0x11   : > { %v187_v1 = vld [vmem:[%s175_s18] sm:$0x3] }
  0x12   : > { %v189_v2 = vadd.f32 %v188_v0, %v187_v1 }
  0x14   : > { %190 = vst [vmem:[%s186_s21] sm:$0x3] %v189_v2 }
  0x15 PF: > { %s12_s11 = sadd.s32 1, %s337_s11   ;;  %s371_s9 = smov %s333_s10 }
  0x16   : > { %p9_p5 = scmp.ge.s32.totalorder %s12_s11, 4   ;;  %s332_s10 = smov %s373_s12  }
  0x18   :  { %11 = sbr.rel (!%p9_p5) target bundleno = 2 (0x2), region = 61 }

</bundles_post_ra>
